<compile_context>
chip_gen: v6e
topology: v6e:2x2x1
jax: 0.10.0
libtpu: 0.0.40
codegen_flags: <defaults>
</compile_context>

<pallas_src>
import functools
import math

import jax
import jax.numpy as jnp
from jax.experimental import pallas as pl
from jax.experimental.pallas import tpu as pltpu


def _choose_seq_tile(S, cap=64):
    """Largest S-tile <= cap that divides S and keeps an (8,128)-friendly block."""
    if S <= cap:
        return S
    for ts in range(cap, 0, -1):
        if S % ts == 0 and ts % 8 == 0:
            return ts
    return S  # fallback: one tile covering all of S


def input_layer_kernel(ids_ref, ts_ref, inv_div_ref, emb_hbm, out_ref,
                       rowbuf, pe_buf, sems, *, seq_tile):
    # ids_ref    : (B, S) int32   SMEM (scalar prefetch)
    # ts_ref     : (1,)   int32   SMEM (scalar prefetch)  -- timestep
    # inv_div_ref: (1, D) f32     VMEM -- 1 / (10000 ** (2*floor(d/2)/D))
    # emb_hbm    : (V, D) f32     HBM  (memory_space=pl.ANY)
    # out_ref    : (1, TS, D) f32 VMEM output block
    # rowbuf     : (TS, D) f32    VMEM scratch (gathered embedding rows)
    # pe_buf     : (TS, D) f32    VMEM scratch (positional encoding tile)
    # sems       : (TS,)          DMA semaphores
    TS = seq_tile
    st = pl.program_id(0)              # which S-tile
    b = pl.program_id(1)               # which batch element
    V, D = emb_hbm.shape
    s_start = st * TS

    # 1) Kick off the row-gather DMAs (only the TS needed rows leave HBM).
    #    Ids are clamped so an out-of-range token cannot read arbitrary HBM
    #    (PyTorch nn.Embedding would raise instead).
    copies = []
    for r in range(TS):
        tok = ids_ref[b, s_start + r]
        tok = jnp.minimum(jnp.maximum(tok, 0), V - 1)
        cp = pltpu.make_async_copy(emb_hbm.at[tok], rowbuf.at[r], sems.at[r])
        cp.start()
        copies.append(cp)

    # 2) Positional encoding for this S-tile, computed once (b == 0) and
    #    reused for all batch elements while the gather DMAs are in flight.
    #    cos(x) = sin(x + pi/2) folds the even/odd select into one sin.
    @pl.when(b == 0)
    def _():
        timestep = ts_ref[0]
        pos = (jax.lax.broadcasted_iota(jnp.int32, (TS, D), 0)
               + s_start + timestep).astype(jnp.float32)            # (TS, D)
        parity = (jax.lax.broadcasted_iota(jnp.int32, (TS, D), 1) % 2
                  ).astype(jnp.float32)                              # (TS, D)
        pe_buf[...] = jnp.sin(pos * inv_div_ref[...]
                              + parity * (math.pi / 2.0))

    # 3) Wait for the gathered rows, add the PE tile, store lane-dense block.
    for cp in copies:
        cp.wait()
    out_ref[0] = rowbuf[...] + pe_buf[...]


def input_layer(seq_ids, emb_table, inv_div, timestep=0):
    """seq_ids: (B, S) int; emb_table: (V, D) f32; inv_div: (1, D) f32."""
    B, S = seq_ids.shape
    V, D = emb_table.shape
    TS = _choose_seq_tile(S)
    n_st = S // TS

    ts_arr = jnp.asarray(timestep, dtype=jnp.int32).reshape(1)
    kernel = functools.partial(input_layer_kernel, seq_tile=TS)

    return pl.pallas_call(
        kernel,
        out_shape=jax.ShapeDtypeStruct((B, S, D), jnp.float32),
        grid_spec=pltpu.PrefetchScalarGridSpec(
            num_scalar_prefetch=2,                 # (ids, timestep) -> SMEM
            grid=(n_st, B),
            in_specs=[
                pl.BlockSpec((1, D), lambda st, b, ids, ts: (0, 0)),  # inv_div
                pl.BlockSpec(memory_space=pl.ANY),                    # table stays in HBM
            ],
            out_specs=pl.BlockSpec((1, TS, D),
                                   lambda st, b, ids, ts: (b, st, 0)),
            scratch_shapes=[
                pltpu.VMEM((TS, D), jnp.float32),      # gathered rows
                pltpu.VMEM((TS, D), jnp.float32),      # PE tile (reused across B)
                pltpu.SemaphoreType.DMA((TS,)),        # one sem per row DMA
            ],
        ),
        compiler_params=pltpu.CompilerParams(
            dimension_semantics=("parallel", "arbitrary")),
    )(seq_ids.astype(jnp.int32), ts_arr, inv_div, emb_table)


# TODO(synk): the PositionalEncodingType.NONE branch (NullPositionalEncoding)
# is a no-op add of zeros; only the SINUSOIDAL branch is implemented here.


if __name__ == "__main__":
    # Small shapes consistent with the module.
    B, S, D = 2, 8, 32          # batch, seq (context window slice), d_model
    V = 32                      # vocab size of the embedding
    MAX_LEN = 16                # context_window_length
    TIMESTEP = 2

    key = jax.random.PRNGKey(0)
    k_ids, k_emb = jax.random.split(key)

    seq = jax.random.randint(k_ids, (B, S), 0, V, dtype=jnp.int32)
    # nn.Embedding default init: N(0, 1)
    emb_table = jax.random.normal(k_emb, (V, D), dtype=jnp.float32)

    # Parameter glue: per-dim divisor exactly as in the torch buffer; the
    # kernel consumes its reciprocal (multiply instead of divide).
    idx = jnp.arange(D) // 2
    div = 10000.0 ** (2.0 * idx.astype(jnp.float32) / D)           # (D,)
    inv_div = (1.0 / div).reshape(1, D)

    out = input_layer(seq, emb_table, inv_div, timestep=TIMESTEP)
    out = jax.block_until_ready(out)

    # Pure-JAX reference of the PyTorch forward.
    pos_full = jnp.arange(MAX_LEN, dtype=jnp.float32)[:, None]
    pe_full = pos_full / div                                       # (MAX_LEN, D)
    pe_full = pe_full.at[:, 0::2].set(jnp.sin(pe_full[:, 0::2]))
    pe_full = pe_full.at[:, 1::2].set(jnp.cos(pe_full[:, 1::2]))
    ref = emb_table[seq] + pe_full[TIMESTEP:TIMESTEP + S][None, :, :]

    assert out.shape == (B, S, D) and out.dtype == jnp.float32
    assert jnp.allclose(out, ref, rtol=1e-5, atol=1e-5), "mismatch vs reference"
    print("KERNEL_OK")
</pallas_src>

<mosaic_0001>
module attributes {stable_mosaic.version = 11 : i64} {
  func.func @input_layer_kernel(%arg0: i32, %arg1: i32, %arg2: memref<2x8xi32, #tpu.memory_space<smem>>, %arg3: memref<1xi32, #tpu.memory_space<smem>>, %arg4: memref<1x32xf32, #tpu.memory_space<vmem>>, %arg5: memref<32x32xf32, #tpu.memory_space<any>>, %arg6: memref<1x8x32xf32, #tpu.memory_space<vmem>>, %arg7: memref<8x32xf32, #tpu.memory_space<vmem>>, %arg8: memref<8x32xf32, #tpu.memory_space<vmem>>, %arg9: memref<8x!tpu.dma_semaphore, #tpu.memory_space<semaphore_mem>>) attributes {dimension_semantics = [#tpu.dimension_semantics<parallel>, #tpu.dimension_semantics<arbitrary>], iteration_bounds = array<i64: 1, 2>, scalar_prefetch = 2 : i64, scratch_operands = 3 : i64, tpu.core_type = #tpu.core_type<tc>, window_params = [{pipeline_mode = #tpu.pipeline_mode<synchronous>, transform_indices = @transform_0, window_bounds = array<i64: 1, 32>}, {}, {transform_indices = @transform_2, window_bounds = array<i64: 1, 8, 32>}]} {
    %c8_i32 = arith.constant 8 : i32
    %0 = arith.muli %arg0, %c8_i32 : i32
    %c0_i32 = arith.constant 0 : i32
    %1 = arith.addi %0, %c0_i32 : i32
    %2 = arith.index_cast %arg1 : i32 to index
    %3 = arith.index_cast %1 : i32 to index
    %4 = memref.load %arg2[%2, %3] : memref<2x8xi32, #tpu.memory_space<smem>>
    %c0_i32_0 = arith.constant 0 : i32
    %5 = arith.maxsi %4, %c0_i32_0 : i32
    %c31_i32 = arith.constant 31 : i32
    %6 = arith.minsi %5, %c31_i32 : i32
    %c0_i32_1 = arith.constant 0 : i32
    %c0_i32_2 = arith.constant 0 : i32
    %c0_i32_3 = arith.constant 0 : i32
    %7 = tpu.memref_slice %arg5[%6, %c0_i32_3] : memref<32x32xf32, #tpu.memory_space<any>> -> memref<1x32xf32, #tpu.memory_space<any>>
    %8 = tpu.memref_squeeze %7 : memref<1x32xf32, #tpu.memory_space<any>> -> memref<32xf32, #tpu.memory_space<any>>
    %c0_i32_4 = arith.constant 0 : i32
    %9 = tpu.memref_slice %arg7[%c0_i32_1, %c0_i32_4] : memref<8x32xf32, #tpu.memory_space<vmem>> -> memref<1x32xf32, #tpu.memory_space<vmem>>
    %10 = tpu.memref_squeeze %9 : memref<1x32xf32, #tpu.memory_space<vmem>> -> memref<32xf32, #tpu.memory_space<vmem>>
    %11 = tpu.memref_slice %arg9[%c0_i32_2] : memref<8x!tpu.dma_semaphore, #tpu.memory_space<semaphore_mem>> -> memref<1x!tpu.dma_semaphore, #tpu.memory_space<semaphore_mem>>
    %12 = tpu.memref_squeeze %11 : memref<1x!tpu.dma_semaphore, #tpu.memory_space<semaphore_mem>> -> memref<!tpu.dma_semaphore, #tpu.memory_space<semaphore_mem>>
    tpu.enqueue_dma source(%8 : memref<32xf32, #tpu.memory_space<any>>) target(%10 : memref<32xf32, #tpu.memory_space<vmem>>) target_semaphore(%12 : memref<!tpu.dma_semaphore, #tpu.memory_space<semaphore_mem>>)
    %c1_i32 = arith.constant 1 : i32
    %13 = arith.addi %0, %c1_i32 : i32
    %14 = arith.index_cast %arg1 : i32 to index
    %15 = arith.index_cast %13 : i32 to index
    %16 = memref.load %arg2[%14, %15] : memref<2x8xi32, #tpu.memory_space<smem>>
    %c0_i32_5 = arith.constant 0 : i32
    %17 = arith.maxsi %16, %c0_i32_5 : i32
    %c31_i32_6 = arith.constant 31 : i32
    %18 = arith.minsi %17, %c31_i32_6 : i32
    %c1_i32_7 = arith.constant 1 : i32
    %c1_i32_8 = arith.constant 1 : i32
    %c0_i32_9 = arith.constant 0 : i32
    %19 = tpu.memref_slice %arg5[%18, %c0_i32_9] : memref<32x32xf32, #tpu.memory_space<any>> -> memref<1x32xf32, #tpu.memory_space<any>>
    %20 = tpu.memref_squeeze %19 : memref<1x32xf32, #tpu.memory_space<any>> -> memref<32xf32, #tpu.memory_space<any>>
    %c0_i32_10 = arith.constant 0 : i32
    %21 = tpu.memref_slice %arg7[%c1_i32_7, %c0_i32_10] : memref<8x32xf32, #tpu.memory_space<vmem>> -> memref<1x32xf32, #tpu.memory_space<vmem>>
    %22 = tpu.memref_squeeze %21 : memref<1x32xf32, #tpu.memory_space<vmem>> -> memref<32xf32, #tpu.memory_space<vmem>>
    %23 = tpu.memref_slice %arg9[%c1_i32_8] : memref<8x!tpu.dma_semaphore, #tpu.memory_space<semaphore_mem>> -> memref<1x!tpu.dma_semaphore, #tpu.memory_space<semaphore_mem>>
    %24 = tpu.memref_squeeze %23 : memref<1x!tpu.dma_semaphore, #tpu.memory_space<semaphore_mem>> -> memref<!tpu.dma_semaphore, #tpu.memory_space<semaphore_mem>>
    tpu.enqueue_dma source(%20 : memref<32xf32, #tpu.memory_space<any>>) target(%22 : memref<32xf32, #tpu.memory_space<vmem>>) target_semaphore(%24 : memref<!tpu.dma_semaphore, #tpu.memory_space<semaphore_mem>>)
    %c2_i32 = arith.constant 2 : i32
    %25 = arith.addi %0, %c2_i32 : i32
    %26 = arith.index_cast %arg1 : i32 to index
    %27 = arith.index_cast %25 : i32 to index
    %28 = memref.load %arg2[%26, %27] : memref<2x8xi32, #tpu.memory_space<smem>>
    %c0_i32_11 = arith.constant 0 : i32
    %29 = arith.maxsi %28, %c0_i32_11 : i32
    %c31_i32_12 = arith.constant 31 : i32
    %30 = arith.minsi %29, %c31_i32_12 : i32
    %c2_i32_13 = arith.constant 2 : i32
    %c2_i32_14 = arith.constant 2 : i32
    %c0_i32_15 = arith.constant 0 : i32
    %31 = tpu.memref_slice %arg5[%30, %c0_i32_15] : memref<32x32xf32, #tpu.memory_space<any>> -> memref<1x32xf32, #tpu.memory_space<any>>
    %32 = tpu.memref_squeeze %31 : memref<1x32xf32, #tpu.memory_space<any>> -> memref<32xf32, #tpu.memory_space<any>>
    %c0_i32_16 = arith.constant 0 : i32
    %33 = tpu.memref_slice %arg7[%c2_i32_13, %c0_i32_16] : memref<8x32xf32, #tpu.memory_space<vmem>> -> memref<1x32xf32, #tpu.memory_space<vmem>>
    %34 = tpu.memref_squeeze %33 : memref<1x32xf32, #tpu.memory_space<vmem>> -> memref<32xf32, #tpu.memory_space<vmem>>
    %35 = tpu.memref_slice %arg9[%c2_i32_14] : memref<8x!tpu.dma_semaphore, #tpu.memory_space<semaphore_mem>> -> memref<1x!tpu.dma_semaphore, #tpu.memory_space<semaphore_mem>>
    %36 = tpu.memref_squeeze %35 : memref<1x!tpu.dma_semaphore, #tpu.memory_space<semaphore_mem>> -> memref<!tpu.dma_semaphore, #tpu.memory_space<semaphore_mem>>
    tpu.enqueue_dma source(%32 : memref<32xf32, #tpu.memory_space<any>>) target(%34 : memref<32xf32, #tpu.memory_space<vmem>>) target_semaphore(%36 : memref<!tpu.dma_semaphore, #tpu.memory_space<semaphore_mem>>)
    %c3_i32 = arith.constant 3 : i32
    %37 = arith.addi %0, %c3_i32 : i32
    %38 = arith.index_cast %arg1 : i32 to index
    %39 = arith.index_cast %37 : i32 to index
    %40 = memref.load %arg2[%38, %39] : memref<2x8xi32, #tpu.memory_space<smem>>
    %c0_i32_17 = arith.constant 0 : i32
    %41 = arith.maxsi %40, %c0_i32_17 : i32
    %c31_i32_18 = arith.constant 31 : i32
    %42 = arith.minsi %41, %c31_i32_18 : i32
    %c3_i32_19 = arith.constant 3 : i32
    %c3_i32_20 = arith.constant 3 : i32
    %c0_i32_21 = arith.constant 0 : i32
    %43 = tpu.memref_slice %arg5[%42, %c0_i32_21] : memref<32x32xf32, #tpu.memory_space<any>> -> memref<1x32xf32, #tpu.memory_space<any>>
    %44 = tpu.memref_squeeze %43 : memref<1x32xf32, #tpu.memory_space<any>> -> memref<32xf32, #tpu.memory_space<any>>
    %c0_i32_22 = arith.constant 0 : i32
    %45 = tpu.memref_slice %arg7[%c3_i32_19, %c0_i32_22] : memref<8x32xf32, #tpu.memory_space<vmem>> -> memref<1x32xf32, #tpu.memory_space<vmem>>
    %46 = tpu.memref_squeeze %45 : memref<1x32xf32, #tpu.memory_space<vmem>> -> memref<32xf32, #tpu.memory_space<vmem>>
    %47 = tpu.memref_slice %arg9[%c3_i32_20] : memref<8x!tpu.dma_semaphore, #tpu.memory_space<semaphore_mem>> -> memref<1x!tpu.dma_semaphore, #tpu.memory_space<semaphore_mem>>
    %48 = tpu.memref_squeeze %47 : memref<1x!tpu.dma_semaphore, #tpu.memory_space<semaphore_mem>> -> memref<!tpu.dma_semaphore, #tpu.memory_space<semaphore_mem>>
    tpu.enqueue_dma source(%44 : memref<32xf32, #tpu.memory_space<any>>) target(%46 : memref<32xf32, #tpu.memory_space<vmem>>) target_semaphore(%48 : memref<!tpu.dma_semaphore, #tpu.memory_space<semaphore_mem>>)
    %c4_i32 = arith.constant 4 : i32
    %49 = arith.addi %0, %c4_i32 : i32
    %50 = arith.index_cast %arg1 : i32 to index
    %51 = arith.index_cast %49 : i32 to index
    %52 = memref.load %arg2[%50, %51] : memref<2x8xi32, #tpu.memory_space<smem>>
    %c0_i32_23 = arith.constant 0 : i32
    %53 = arith.maxsi %52, %c0_i32_23 : i32
    %c31_i32_24 = arith.constant 31 : i32
    %54 = arith.minsi %53, %c31_i32_24 : i32
    %c4_i32_25 = arith.constant 4 : i32
    %c4_i32_26 = arith.constant 4 : i32
    %c0_i32_27 = arith.constant 0 : i32
    %55 = tpu.memref_slice %arg5[%54, %c0_i32_27] : memref<32x32xf32, #tpu.memory_space<any>> -> memref<1x32xf32, #tpu.memory_space<any>>
    %56 = tpu.memref_squeeze %55 : memref<1x32xf32, #tpu.memory_space<any>> -> memref<32xf32, #tpu.memory_space<any>>
    %c0_i32_28 = arith.constant 0 : i32
    %57 = tpu.memref_slice %arg7[%c4_i32_25, %c0_i32_28] : memref<8x32xf32, #tpu.memory_space<vmem>> -> memref<1x32xf32, #tpu.memory_space<vmem>>
    %58 = tpu.memref_squeeze %57 : memref<1x32xf32, #tpu.memory_space<vmem>> -> memref<32xf32, #tpu.memory_space<vmem>>
    %59 = tpu.memref_slice %arg9[%c4_i32_26] : memref<8x!tpu.dma_semaphore, #tpu.memory_space<semaphore_mem>> -> memref<1x!tpu.dma_semaphore, #tpu.memory_space<semaphore_mem>>
    %60 = tpu.memref_squeeze %59 : memref<1x!tpu.dma_semaphore, #tpu.memory_space<semaphore_mem>> -> memref<!tpu.dma_semaphore, #tpu.memory_space<semaphore_mem>>
    tpu.enqueue_dma source(%56 : memref<32xf32, #tpu.memory_space<any>>) target(%58 : memref<32xf32, #tpu.memory_space<vmem>>) target_semaphore(%60 : memref<!tpu.dma_semaphore, #tpu.memory_space<semaphore_mem>>)
    %c5_i32 = arith.constant 5 : i32
    %61 = arith.addi %0, %c5_i32 : i32
    %62 = arith.index_cast %arg1 : i32 to index
    %63 = arith.index_cast %61 : i32 to index
    %64 = memref.load %arg2[%62, %63] : memref<2x8xi32, #tpu.memory_space<smem>>
    %c0_i32_29 = arith.constant 0 : i32
    %65 = arith.maxsi %64, %c0_i32_29 : i32
    %c31_i32_30 = arith.constant 31 : i32
    %66 = arith.minsi %65, %c31_i32_30 : i32
    %c5_i32_31 = arith.constant 5 : i32
    %c5_i32_32 = arith.constant 5 : i32
    %c0_i32_33 = arith.constant 0 : i32
    %67 = tpu.memref_slice %arg5[%66, %c0_i32_33] : memref<32x32xf32, #tpu.memory_space<any>> -> memref<1x32xf32, #tpu.memory_space<any>>
    %68 = tpu.memref_squeeze %67 : memref<1x32xf32, #tpu.memory_space<any>> -> memref<32xf32, #tpu.memory_space<any>>
    %c0_i32_34 = arith.constant 0 : i32
    %69 = tpu.memref_slice %arg7[%c5_i32_31, %c0_i32_34] : memref<8x32xf32, #tpu.memory_space<vmem>> -> memref<1x32xf32, #tpu.memory_space<vmem>>
    %70 = tpu.memref_squeeze %69 : memref<1x32xf32, #tpu.memory_space<vmem>> -> memref<32xf32, #tpu.memory_space<vmem>>
    %71 = tpu.memref_slice %arg9[%c5_i32_32] : memref<8x!tpu.dma_semaphore, #tpu.memory_space<semaphore_mem>> -> memref<1x!tpu.dma_semaphore, #tpu.memory_space<semaphore_mem>>
    %72 = tpu.memref_squeeze %71 : memref<1x!tpu.dma_semaphore, #tpu.memory_space<semaphore_mem>> -> memref<!tpu.dma_semaphore, #tpu.memory_space<semaphore_mem>>
    tpu.enqueue_dma source(%68 : memref<32xf32, #tpu.memory_space<any>>) target(%70 : memref<32xf32, #tpu.memory_space<vmem>>) target_semaphore(%72 : memref<!tpu.dma_semaphore, #tpu.memory_space<semaphore_mem>>)
    %c6_i32 = arith.constant 6 : i32
    %73 = arith.addi %0, %c6_i32 : i32
    %74 = arith.index_cast %arg1 : i32 to index
    %75 = arith.index_cast %73 : i32 to index
    %76 = memref.load %arg2[%74, %75] : memref<2x8xi32, #tpu.memory_space<smem>>
    %c0_i32_35 = arith.constant 0 : i32
    %77 = arith.maxsi %76, %c0_i32_35 : i32
    %c31_i32_36 = arith.constant 31 : i32
    %78 = arith.minsi %77, %c31_i32_36 : i32
    %c6_i32_37 = arith.constant 6 : i32
    %c6_i32_38 = arith.constant 6 : i32
    %c0_i32_39 = arith.constant 0 : i32
    %79 = tpu.memref_slice %arg5[%78, %c0_i32_39] : memref<32x32xf32, #tpu.memory_space<any>> -> memref<1x32xf32, #tpu.memory_space<any>>
    %80 = tpu.memref_squeeze %79 : memref<1x32xf32, #tpu.memory_space<any>> -> memref<32xf32, #tpu.memory_space<any>>
    %c0_i32_40 = arith.constant 0 : i32
    %81 = tpu.memref_slice %arg7[%c6_i32_37, %c0_i32_40] : memref<8x32xf32, #tpu.memory_space<vmem>> -> memref<1x32xf32, #tpu.memory_space<vmem>>
    %82 = tpu.memref_squeeze %81 : memref<1x32xf32, #tpu.memory_space<vmem>> -> memref<32xf32, #tpu.memory_space<vmem>>
    %83 = tpu.memref_slice %arg9[%c6_i32_38] : memref<8x!tpu.dma_semaphore, #tpu.memory_space<semaphore_mem>> -> memref<1x!tpu.dma_semaphore, #tpu.memory_space<semaphore_mem>>
    %84 = tpu.memref_squeeze %83 : memref<1x!tpu.dma_semaphore, #tpu.memory_space<semaphore_mem>> -> memref<!tpu.dma_semaphore, #tpu.memory_space<semaphore_mem>>
    tpu.enqueue_dma source(%80 : memref<32xf32, #tpu.memory_space<any>>) target(%82 : memref<32xf32, #tpu.memory_space<vmem>>) target_semaphore(%84 : memref<!tpu.dma_semaphore, #tpu.memory_space<semaphore_mem>>)
    %c7_i32 = arith.constant 7 : i32
    %85 = arith.addi %0, %c7_i32 : i32
    %86 = arith.index_cast %arg1 : i32 to index
    %87 = arith.index_cast %85 : i32 to index
    %88 = memref.load %arg2[%86, %87] : memref<2x8xi32, #tpu.memory_space<smem>>
    %c0_i32_41 = arith.constant 0 : i32
    %89 = arith.maxsi %88, %c0_i32_41 : i32
    %c31_i32_42 = arith.constant 31 : i32
    %90 = arith.minsi %89, %c31_i32_42 : i32
    %c7_i32_43 = arith.constant 7 : i32
    %c7_i32_44 = arith.constant 7 : i32
    %c0_i32_45 = arith.constant 0 : i32
    %91 = tpu.memref_slice %arg5[%90, %c0_i32_45] : memref<32x32xf32, #tpu.memory_space<any>> -> memref<1x32xf32, #tpu.memory_space<any>>
    %92 = tpu.memref_squeeze %91 : memref<1x32xf32, #tpu.memory_space<any>> -> memref<32xf32, #tpu.memory_space<any>>
    %c0_i32_46 = arith.constant 0 : i32
    %93 = tpu.memref_slice %arg7[%c7_i32_43, %c0_i32_46] : memref<8x32xf32, #tpu.memory_space<vmem>> -> memref<1x32xf32, #tpu.memory_space<vmem>>
    %94 = tpu.memref_squeeze %93 : memref<1x32xf32, #tpu.memory_space<vmem>> -> memref<32xf32, #tpu.memory_space<vmem>>
    %95 = tpu.memref_slice %arg9[%c7_i32_44] : memref<8x!tpu.dma_semaphore, #tpu.memory_space<semaphore_mem>> -> memref<1x!tpu.dma_semaphore, #tpu.memory_space<semaphore_mem>>
    %96 = tpu.memref_squeeze %95 : memref<1x!tpu.dma_semaphore, #tpu.memory_space<semaphore_mem>> -> memref<!tpu.dma_semaphore, #tpu.memory_space<semaphore_mem>>
    tpu.enqueue_dma source(%92 : memref<32xf32, #tpu.memory_space<any>>) target(%94 : memref<32xf32, #tpu.memory_space<vmem>>) target_semaphore(%96 : memref<!tpu.dma_semaphore, #tpu.memory_space<semaphore_mem>>)
    %c0_i32_47 = arith.constant 0 : i32
    %97 = arith.cmpi eq, %arg1, %c0_i32_47 : i32
    %98 = arith.extui %97 : i1 to i32
    %c0_i32_48 = arith.constant 0 : i32
    %99 = arith.cmpi ne, %98, %c0_i32_48 : i32
    scf.if %99 {
      %c0_87 = arith.constant 0 : index
      %154 = memref.load %arg3[%c0_87] : memref<1xi32, #tpu.memory_space<smem>>
      %155 = tpu.iota {dimensions = array<i32: 0>} : vector<8x32xi32>
      %156 = vector.broadcast %0 : i32 to vector<8x32xi32>
      %157 = arith.addi %155, %156 : vector<8x32xi32>
      %158 = vector.broadcast %154 : i32 to vector<8x32xi32>
      %159 = arith.addi %157, %158 : vector<8x32xi32>
      %160 = arith.sitofp %159 : vector<8x32xi32> to vector<8x32xf32>
      %161 = tpu.iota {dimensions = array<i32: 1>} : vector<8x32xi32>
      %c2_i32_88 = arith.constant 2 : i32
      %c0_i32_89 = arith.constant 0 : i32
      %162 = arith.cmpi eq, %c2_i32_88, %c0_i32_89 : i32
      %c1_i32_90 = arith.constant 1 : i32
      %163 = arith.select %162, %c1_i32_90, %c2_i32_88 : i32
      %164 = vector.broadcast %163 : i32 to vector<8x32xi32>
      %165 = arith.remsi %161, %164 : vector<8x32xi32>
      %c0_i32_91 = arith.constant 0 : i32
      %166 = vector.broadcast %c0_i32_91 : i32 to vector<8x32xi32>
      %167 = arith.cmpi ne, %165, %166 : vector<8x32xi32>
      %c0_i32_92 = arith.constant 0 : i32
      %168 = vector.broadcast %c0_i32_92 : i32 to vector<8x32xi32>
      %169 = arith.cmpi slt, %165, %168 : vector<8x32xi32>
      %c0_i32_93 = arith.constant 0 : i32
      %170 = arith.cmpi slt, %163, %c0_i32_93 : i32
      %171 = vector.broadcast %170 : i1 to vector<8x32xi1>
      %172 = vector.broadcast %171 : vector<8x32xi1> to vector<8x32xi1>
      %173 = arith.xori %169, %172 : vector<8x32xi1>
      %174 = arith.andi %173, %167 : vector<8x32xi1>
      %175 = vector.broadcast %163 : i32 to vector<8x32xi32>
      %176 = arith.addi %165, %175 : vector<8x32xi32>
      %177 = arith.select %174, %176, %165 : vector<8x32xi1>, vector<8x32xi32>
      %178 = arith.sitofp %177 : vector<8x32xi32> to vector<8x32xf32>
      %c0_94 = arith.constant 0 : index
      %c0_95 = arith.constant 0 : index
      %179 = vector.load %arg4[%c0_94, %c0_95] : memref<1x32xf32, #tpu.memory_space<vmem>>, vector<1x32xf32>
      %180 = vector.broadcast %179 : vector<1x32xf32> to vector<8x32xf32>
      %181 = arith.mulf %160, %180 : vector<8x32xf32>
      %cst = arith.constant 1.57079637 : f32
      %182 = vector.broadcast %cst : f32 to vector<8x32xf32>
      %183 = arith.mulf %178, %182 : vector<8x32xf32>
      %184 = arith.addf %181, %183 : vector<8x32xf32>
      %185 = math.sin %184 : vector<8x32xf32>
      %c0_96 = arith.constant 0 : index
      %c0_97 = arith.constant 0 : index
      %186 = vector.load %arg8[%c0_96, %c0_97] : memref<8x32xf32, #tpu.memory_space<vmem>>, vector<8x32xf32>
      tpu.vector_store %arg8[%c0_96, %c0_97], %185 {strides = array<i32>} : memref<8x32xf32, #tpu.memory_space<vmem>>, vector<8x32xf32>,
    } else {
    }
    %c0_i32_49 = arith.constant 0 : i32
    %c0_i32_50 = arith.constant 0 : i32
    %c0_i32_51 = arith.constant 0 : i32
    %100 = tpu.memref_slice %arg5[%6, %c0_i32_51] : memref<32x32xf32, #tpu.memory_space<any>> -> memref<1x32xf32, #tpu.memory_space<any>>
    %101 = tpu.memref_squeeze %100 : memref<1x32xf32, #tpu.memory_space<any>> -> memref<32xf32, #tpu.memory_space<any>>
    %c0_i32_52 = arith.constant 0 : i32
    %102 = tpu.memref_slice %arg7[%c0_i32_49, %c0_i32_52] : memref<8x32xf32, #tpu.memory_space<vmem>> -> memref<1x32xf32, #tpu.memory_space<vmem>>
    %103 = tpu.memref_squeeze %102 : memref<1x32xf32, #tpu.memory_space<vmem>> -> memref<32xf32, #tpu.memory_space<vmem>>
    %104 = tpu.memref_slice %arg9[%c0_i32_50] : memref<8x!tpu.dma_semaphore, #tpu.memory_space<semaphore_mem>> -> memref<1x!tpu.dma_semaphore, #tpu.memory_space<semaphore_mem>>
    %105 = tpu.memref_squeeze %104 : memref<1x!tpu.dma_semaphore, #tpu.memory_space<semaphore_mem>> -> memref<!tpu.dma_semaphore, #tpu.memory_space<semaphore_mem>>
    tpu.wait_dma2 semaphore(%105 : memref<!tpu.dma_semaphore, #tpu.memory_space<semaphore_mem>>) src(%101 : memref<32xf32, #tpu.memory_space<any>>) dst(%103 : memref<32xf32, #tpu.memory_space<vmem>>)
    %c1_i32_53 = arith.constant 1 : i32
    %c1_i32_54 = arith.constant 1 : i32
    %c0_i32_55 = arith.constant 0 : i32
    %106 = tpu.memref_slice %arg5[%18, %c0_i32_55] : memref<32x32xf32, #tpu.memory_space<any>> -> memref<1x32xf32, #tpu.memory_space<any>>
    %107 = tpu.memref_squeeze %106 : memref<1x32xf32, #tpu.memory_space<any>> -> memref<32xf32, #tpu.memory_space<any>>
    %c0_i32_56 = arith.constant 0 : i32
    %108 = tpu.memref_slice %arg7[%c1_i32_53, %c0_i32_56] : memref<8x32xf32, #tpu.memory_space<vmem>> -> memref<1x32xf32, #tpu.memory_space<vmem>>
    %109 = tpu.memref_squeeze %108 : memref<1x32xf32, #tpu.memory_space<vmem>> -> memref<32xf32, #tpu.memory_space<vmem>>
    %110 = tpu.memref_slice %arg9[%c1_i32_54] : memref<8x!tpu.dma_semaphore, #tpu.memory_space<semaphore_mem>> -> memref<1x!tpu.dma_semaphore, #tpu.memory_space<semaphore_mem>>
    %111 = tpu.memref_squeeze %110 : memref<1x!tpu.dma_semaphore, #tpu.memory_space<semaphore_mem>> -> memref<!tpu.dma_semaphore, #tpu.memory_space<semaphore_mem>>
    tpu.wait_dma2 semaphore(%111 : memref<!tpu.dma_semaphore, #tpu.memory_space<semaphore_mem>>) src(%107 : memref<32xf32, #tpu.memory_space<any>>) dst(%109 : memref<32xf32, #tpu.memory_space<vmem>>)
    %c2_i32_57 = arith.constant 2 : i32
    %c2_i32_58 = arith.constant 2 : i32
    %c0_i32_59 = arith.constant 0 : i32
    %112 = tpu.memref_slice %arg5[%30, %c0_i32_59] : memref<32x32xf32, #tpu.memory_space<any>> -> memref<1x32xf32, #tpu.memory_space<any>>
    %113 = tpu.memref_squeeze %112 : memref<1x32xf32, #tpu.memory_space<any>> -> memref<32xf32, #tpu.memory_space<any>>
    %c0_i32_60 = arith.constant 0 : i32
    %114 = tpu.memref_slice %arg7[%c2_i32_57, %c0_i32_60] : memref<8x32xf32, #tpu.memory_space<vmem>> -> memref<1x32xf32, #tpu.memory_space<vmem>>
    %115 = tpu.memref_squeeze %114 : memref<1x32xf32, #tpu.memory_space<vmem>> -> memref<32xf32, #tpu.memory_space<vmem>>
    %116 = tpu.memref_slice %arg9[%c2_i32_58] : memref<8x!tpu.dma_semaphore, #tpu.memory_space<semaphore_mem>> -> memref<1x!tpu.dma_semaphore, #tpu.memory_space<semaphore_mem>>
    %117 = tpu.memref_squeeze %116 : memref<1x!tpu.dma_semaphore, #tpu.memory_space<semaphore_mem>> -> memref<!tpu.dma_semaphore, #tpu.memory_space<semaphore_mem>>
    tpu.wait_dma2 semaphore(%117 : memref<!tpu.dma_semaphore, #tpu.memory_space<semaphore_mem>>) src(%113 : memref<32xf32, #tpu.memory_space<any>>) dst(%115 : memref<32xf32, #tpu.memory_space<vmem>>)
    %c3_i32_61 = arith.constant 3 : i32
    %c3_i32_62 = arith.constant 3 : i32
    %c0_i32_63 = arith.constant 0 : i32
    %118 = tpu.memref_slice %arg5[%42, %c0_i32_63] : memref<32x32xf32, #tpu.memory_space<any>> -> memref<1x32xf32, #tpu.memory_space<any>>
    %119 = tpu.memref_squeeze %118 : memref<1x32xf32, #tpu.memory_space<any>> -> memref<32xf32, #tpu.memory_space<any>>
    %c0_i32_64 = arith.constant 0 : i32
    %120 = tpu.memref_slice %arg7[%c3_i32_61, %c0_i32_64] : memref<8x32xf32, #tpu.memory_space<vmem>> -> memref<1x32xf32, #tpu.memory_space<vmem>>
    %121 = tpu.memref_squeeze %120 : memref<1x32xf32, #tpu.memory_space<vmem>> -> memref<32xf32, #tpu.memory_space<vmem>>
    %122 = tpu.memref_slice %arg9[%c3_i32_62] : memref<8x!tpu.dma_semaphore, #tpu.memory_space<semaphore_mem>> -> memref<1x!tpu.dma_semaphore, #tpu.memory_space<semaphore_mem>>
    %123 = tpu.memref_squeeze %122 : memref<1x!tpu.dma_semaphore, #tpu.memory_space<semaphore_mem>> -> memref<!tpu.dma_semaphore, #tpu.memory_space<semaphore_mem>>
    tpu.wait_dma2 semaphore(%123 : memref<!tpu.dma_semaphore, #tpu.memory_space<semaphore_mem>>) src(%119 : memref<32xf32, #tpu.memory_space<any>>) dst(%121 : memref<32xf32, #tpu.memory_space<vmem>>)
    %c4_i32_65 = arith.constant 4 : i32
    %c4_i32_66 = arith.constant 4 : i32
    %c0_i32_67 = arith.constant 0 : i32
    %124 = tpu.memref_slice %arg5[%54, %c0_i32_67] : memref<32x32xf32, #tpu.memory_space<any>> -> memref<1x32xf32, #tpu.memory_space<any>>
    %125 = tpu.memref_squeeze %124 : memref<1x32xf32, #tpu.memory_space<any>> -> memref<32xf32, #tpu.memory_space<any>>
    %c0_i32_68 = arith.constant 0 : i32
    %126 = tpu.memref_slice %arg7[%c4_i32_65, %c0_i32_68] : memref<8x32xf32, #tpu.memory_space<vmem>> -> memref<1x32xf32, #tpu.memory_space<vmem>>
    %127 = tpu.memref_squeeze %126 : memref<1x32xf32, #tpu.memory_space<vmem>> -> memref<32xf32, #tpu.memory_space<vmem>>
    %128 = tpu.memref_slice %arg9[%c4_i32_66] : memref<8x!tpu.dma_semaphore, #tpu.memory_space<semaphore_mem>> -> memref<1x!tpu.dma_semaphore, #tpu.memory_space<semaphore_mem>>
    %129 = tpu.memref_squeeze %128 : memref<1x!tpu.dma_semaphore, #tpu.memory_space<semaphore_mem>> -> memref<!tpu.dma_semaphore, #tpu.memory_space<semaphore_mem>>
    tpu.wait_dma2 semaphore(%129 : memref<!tpu.dma_semaphore, #tpu.memory_space<semaphore_mem>>) src(%125 : memref<32xf32, #tpu.memory_space<any>>) dst(%127 : memref<32xf32, #tpu.memory_space<vmem>>)
    %c5_i32_69 = arith.constant 5 : i32
    %c5_i32_70 = arith.constant 5 : i32
    %c0_i32_71 = arith.constant 0 : i32
    %130 = tpu.memref_slice %arg5[%66, %c0_i32_71] : memref<32x32xf32, #tpu.memory_space<any>> -> memref<1x32xf32, #tpu.memory_space<any>>
    %131 = tpu.memref_squeeze %130 : memref<1x32xf32, #tpu.memory_space<any>> -> memref<32xf32, #tpu.memory_space<any>>
    %c0_i32_72 = arith.constant 0 : i32
    %132 = tpu.memref_slice %arg7[%c5_i32_69, %c0_i32_72] : memref<8x32xf32, #tpu.memory_space<vmem>> -> memref<1x32xf32, #tpu.memory_space<vmem>>
    %133 = tpu.memref_squeeze %132 : memref<1x32xf32, #tpu.memory_space<vmem>> -> memref<32xf32, #tpu.memory_space<vmem>>
    %134 = tpu.memref_slice %arg9[%c5_i32_70] : memref<8x!tpu.dma_semaphore, #tpu.memory_space<semaphore_mem>> -> memref<1x!tpu.dma_semaphore, #tpu.memory_space<semaphore_mem>>
    %135 = tpu.memref_squeeze %134 : memref<1x!tpu.dma_semaphore, #tpu.memory_space<semaphore_mem>> -> memref<!tpu.dma_semaphore, #tpu.memory_space<semaphore_mem>>
    tpu.wait_dma2 semaphore(%135 : memref<!tpu.dma_semaphore, #tpu.memory_space<semaphore_mem>>) src(%131 : memref<32xf32, #tpu.memory_space<any>>) dst(%133 : memref<32xf32, #tpu.memory_space<vmem>>)
    %c6_i32_73 = arith.constant 6 : i32
    %c6_i32_74 = arith.constant 6 : i32
    %c0_i32_75 = arith.constant 0 : i32
    %136 = tpu.memref_slice %arg5[%78, %c0_i32_75] : memref<32x32xf32, #tpu.memory_space<any>> -> memref<1x32xf32, #tpu.memory_space<any>>
    %137 = tpu.memref_squeeze %136 : memref<1x32xf32, #tpu.memory_space<any>> -> memref<32xf32, #tpu.memory_space<any>>
    %c0_i32_76 = arith.constant 0 : i32
    %138 = tpu.memref_slice %arg7[%c6_i32_73, %c0_i32_76] : memref<8x32xf32, #tpu.memory_space<vmem>> -> memref<1x32xf32, #tpu.memory_space<vmem>>
    %139 = tpu.memref_squeeze %138 : memref<1x32xf32, #tpu.memory_space<vmem>> -> memref<32xf32, #tpu.memory_space<vmem>>
    %140 = tpu.memref_slice %arg9[%c6_i32_74] : memref<8x!tpu.dma_semaphore, #tpu.memory_space<semaphore_mem>> -> memref<1x!tpu.dma_semaphore, #tpu.memory_space<semaphore_mem>>
    %141 = tpu.memref_squeeze %140 : memref<1x!tpu.dma_semaphore, #tpu.memory_space<semaphore_mem>> -> memref<!tpu.dma_semaphore, #tpu.memory_space<semaphore_mem>>
    tpu.wait_dma2 semaphore(%141 : memref<!tpu.dma_semaphore, #tpu.memory_space<semaphore_mem>>) src(%137 : memref<32xf32, #tpu.memory_space<any>>) dst(%139 : memref<32xf32, #tpu.memory_space<vmem>>)
    %c7_i32_77 = arith.constant 7 : i32
    %c7_i32_78 = arith.constant 7 : i32
    %c0_i32_79 = arith.constant 0 : i32
    %142 = tpu.memref_slice %arg5[%90, %c0_i32_79] : memref<32x32xf32, #tpu.memory_space<any>> -> memref<1x32xf32, #tpu.memory_space<any>>
    %143 = tpu.memref_squeeze %142 : memref<1x32xf32, #tpu.memory_space<any>> -> memref<32xf32, #tpu.memory_space<any>>
    %c0_i32_80 = arith.constant 0 : i32
    %144 = tpu.memref_slice %arg7[%c7_i32_77, %c0_i32_80] : memref<8x32xf32, #tpu.memory_space<vmem>> -> memref<1x32xf32, #tpu.memory_space<vmem>>
    %145 = tpu.memref_squeeze %144 : memref<1x32xf32, #tpu.memory_space<vmem>> -> memref<32xf32, #tpu.memory_space<vmem>>
    %146 = tpu.memref_slice %arg9[%c7_i32_78] : memref<8x!tpu.dma_semaphore, #tpu.memory_space<semaphore_mem>> -> memref<1x!tpu.dma_semaphore, #tpu.memory_space<semaphore_mem>>
    %147 = tpu.memref_squeeze %146 : memref<1x!tpu.dma_semaphore, #tpu.memory_space<semaphore_mem>> -> memref<!tpu.dma_semaphore, #tpu.memory_space<semaphore_mem>>
    tpu.wait_dma2 semaphore(%147 : memref<!tpu.dma_semaphore, #tpu.memory_space<semaphore_mem>>) src(%143 : memref<32xf32, #tpu.memory_space<any>>) dst(%145 : memref<32xf32, #tpu.memory_space<vmem>>)
    %c0 = arith.constant 0 : index
    %c0_81 = arith.constant 0 : index
    %148 = vector.load %arg7[%c0, %c0_81] : memref<8x32xf32, #tpu.memory_space<vmem>>, vector<8x32xf32>
    %c0_82 = arith.constant 0 : index
    %c0_83 = arith.constant 0 : index
    %149 = vector.load %arg8[%c0_82, %c0_83] : memref<8x32xf32, #tpu.memory_space<vmem>>, vector<8x32xf32>
    %150 = arith.addf %148, %149 : vector<8x32xf32>
    %c0_84 = arith.constant 0 : index
    %c0_85 = arith.constant 0 : index
    %c0_86 = arith.constant 0 : index
    %151 = vector.load %arg6[%c0_84, %c0_85, %c0_86] : memref<1x8x32xf32, #tpu.memory_space<vmem>>, vector<1x8x32xf32>
    %152 = vector.shape_cast %151 : vector<1x8x32xf32> to vector<8x32xf32>
    %153 = vector.shape_cast %150 : vector<8x32xf32> to vector<1x8x32xf32>
    tpu.vector_store %arg6[%c0_84, %c0_85, %c0_86], %153 {strides = array<i32>} : memref<1x8x32xf32, #tpu.memory_space<vmem>>, vector<1x8x32xf32>,
    return
  }
  func.func @transform_0(%arg0: i32, %arg1: i32, %arg2: memref<2x8xi32, #tpu.memory_space<smem>>, %arg3: memref<1xi32, #tpu.memory_space<smem>>) -> (i32, i32) {
    %c0_i32 = arith.constant 0 : i32
    %c0_i32_0 = arith.constant 0 : i32
    %c0_i32_1 = arith.constant 0 : i32
    return %c0_i32, %c0_i32_0 : i32, i32
  }
  func.func @transform_2(%arg0: i32, %arg1: i32, %arg2: memref<2x8xi32, #tpu.memory_space<smem>>, %arg3: memref<1xi32, #tpu.memory_space<smem>>) -> (i32, i32, i32) {
    %c0_i32 = arith.constant 0 : i32
    %c0_i32_0 = arith.constant 0 : i32
    return %arg1, %arg0, %c0_i32 : i32, i32, i32
  }
}

</mosaic_0001>

<bundles_post_ra>
// kernel: tpu_custom_call.1
= control target key start
LH: loop header
LB: loop body
LE: loop exit
PB: predicated region body
PF: predicated region fallthrough
CT: control target
= control target key end

     0   :  { %s1442_s0 = inlined_call_operand.vmem [shape: s32[2,8], index: 0, kind: input, shape index: {}]   ;;  %s1443_s1 = inlined_call_operand.<no memory space> [shape: s32[1], index: 1, kind: input, shape index: {}]   ;;  %s1444_s2 = inlined_call_operand.vmem [shape: f32[1,32], index: 2, kind: input, shape index: {}]   ;;  %s1445_s3 = inlined_call_operand.hbm [shape: f32[32,32], index: 3, kind: input, shape index: {}]   ;;  %s1446_s4 = inlined_call_operand.hbm [shape: f32[2,8,32], index: 4, kind: output, shape index: {}]  }
   0x1   :  { %s9_s17 = sshll.u32 %s1442_s0, 4  ;;  %13 = sst [smem:[#allocation7]] %s1443_s1  ;;  %s10_s17 = int_to_ptr.vmem [resolvable:$true] %s9_s17 }
   0x2   :  { %s820_s20 = scalar_lea.vmem %s10_s17, 32  ;;  %p825_p1 = scmp.lt.s32.totalorder %s10_s17, %s10_s17 }
   0x3   :  { %p821_p0 = scmp.ne.s32.totalorder %s10_s17, %s820_s20  ;;  %p826_p2 = scmp.lt.s32.totalorder %s820_s20, %s820_s20 }
   0x5   :  { %p827_p3 = por %p826_p2, %p825_p1 }
   0x7   :  { %p828_p4 = pnand %p827_p3, %p821_p0 }
   0x9   :  { %831 = shalt.err (!%p828_p4)  }
   0xa   :  { %s1104_s21 = smov [#allocation6]  }
   0xb   :  { %12 = dma.vmem_to_smem %s10_s17, 32, %s1104_s21, [#allocation5] }
   0xc   :  { %1058 = dma.done.wait [#allocation5], 32 }
   0xd   :  { %1059 = vsyncadd [#allocation5], 4294967264 }
   0xe   :  { %15 = sfence }
   0xf   :  { %16 = vsyncpa [#allocation9], 0 }
  0x10   :  { %18 = vsyncpa [#allocation9 + $0x1], 0  ;;  %s1151_s0 = smov 0   ;;  %s1153_s22 = smov 0  }
  0x11   :  { %s1155_s1 = smov 0   ;;  %s1157_s23 = smov 0  }
  0x12   :  { %s1159_s24 = smov 0   ;;  %s1161_s25 = smov 0  }
  0x13 LB: > { %1450 = sst [smem:[#allocation38_spill]] %s1098_s24  ;;  %s647_s26 = sadd.s32 4294967295, %s1102_s25   ;;  %s1102_s25 = sphi %s1161_s25, %s24_s25   ;;  %s1098_s24 = sphi %s1159_s24, %s1460_s24   ;;  %s1094_s23 = sphi %s1157_s23, %s1459_s23   ;;  %s1090_s1 = sphi %s1155_s1, %s1463_s1   ;;  %s1086_s22 = sphi %s1153_s22, %s1462_s22   ;;  %s1082_s0 = sphi %s1151_s0, %s1461_s0  }
  0x14   : > { %s648_s27 = sadd.s32 4294967294, %s1102_s25   ;;  %s33_s28 = sadd.s32 1, %s1098_s24 }
  0x15   : > { %s66_s29 = sadd.s32 1, %s1090_s1  ;;  %p34_p5 = scmp.ge.s32.totalorder %s33_s28, 2 }
  0x16   : > { %p76_p6 = scmp.ne.s32.totalorder %s1090_s1, %s1086_s22  ;;  %p77_p7 = scmp.eq.s32.totalorder %s647_s26, 1 }
  0x17   : > { %p82_p8 = scmp.ne.s32.totalorder %s1086_s22, %s1082_s0  ;;  %s1465_s28 = smov (%p34_p5, %s33_s28), 0 }
  0x18   : > { %1451 = sst [smem:[#allocation39_spill]] %s1465_s28  ;;  %p1191_p9 = por %p77_p7, %p76_p6 }
  0x19   : > { %p83_p10 = scmp.eq.s32.totalorder %s648_s27, 1  ;;  %s61_s5 = ssub.s32 %s1098_s24, %s1465_s28 }
  0x1a   : > { %p650_p11 = scmp.ge.s32.totalorder %s1102_s25, 1  ;;  %p64_p12 = scmp.eq.s32.totalorder %s61_s5, 0 }
  0x1b   : > { %p1198_p13 = por %p83_p10, %p82_p8  ;;  %p104_p0 = scmp.lt.s32.totalorder %s1102_s25, 3 }
  0x1c   : > { %s1204_s7 = scalar_select %p64_p12, %s1090_s1, %s66_s29  }
  0x1d   : > { %p105_p1 = pnand %p650_p11, %p104_p0 }
  0x1e   : > { %1454 = sst [smem:[#allocation40_spill]] %s1204_s7  ;;  %s1447_s8 = sand.u32 (!%p105_p1), 1, %s1086_s22  }
  0x1f   : > { %108 = sbr.rel (%p105_p1) target bundleno = 366 (0x16e), region = 24  ;;  %s1208_s9 = sshll.u32 (!%p105_p1), %s1094_s23, 7 }
  0x20   : > { %s1212_s10 = sshll.u32 (!%p105_p1), %s1447_s8, 3  ;;  %s127_s11 = sld [smem:[#allocation6 + %s1208_s9]] (!%p105_p1) }
  0x21   : > { %s1105_s12 = smov (!%p105_p1), [#allocation2]   ;;  %s152_s14 = sadd.s32 (!%p105_p1), 1, %s1208_s9 }
  0x22   : > { %s141_s13 = sshll.u32 (!%p105_p1), %s1105_s12, 4  ;;  %s1218_s15 = sld [smem:[#allocation6 + %s152_s14]] (!%p105_p1)  ;;  %s1216_s13 = int_to_ptr.vmem [resolvable:$true] %s141_s13 }
  0x23   : > { %s180_s16 = sadd.s32 (!%p105_p1), 2, %s1208_s9  ;;  %s1106_s17 = smov (!%p105_p1), [#allocation2 + $0x1]  }
  0x24   : > { %s169_s18 = sshll.u32 %s1106_s17, 4  ;;  %s1221_s19 = sld [smem:[#allocation6 + %s180_s16]]  ;;  %s1223_s18 = int_to_ptr.vmem [resolvable:$true] %s169_s18 }
  0x25   : > { %s1236_s16 = scalar_lea.hbm %s1445_s3, 512 }
  0x26   : > { %p128_p2 = scmp.gt.s32.totalorder %s127_s11, 0  ;;  %p653_p3 = scmp.lt.s32.totalorder %s127_s11, 31 }
  0x28   : > { %s1467_s11 = smov (!%p128_p2, %s127_s11), 0  ;;  %p154_p4 = scmp.gt.s32.totalorder %s1218_s15, 0 }
  0x29   : > { %p660_p5 = scmp.lt.s32.totalorder %s1218_s15, 31  ;;  %s1469_s11 = smov (!%p653_p3, %s1467_s11), 31 }
  0x2a   : > { %s155_s20 = scalar_select %p154_p4, %s1218_s15, 0 }
  0x2b   : > { %s658_s21 = sshll.u32 %s1469_s11, 4  ;;  %p182_p6 = scmp.gt.s32.totalorder %s1221_s19, 0 }
  0x2c   : > { %s133_s29 = scalar_lea.hbm %s1445_s3, %s658_s21 }
  0x2d   : > { %s832_s5 = scalar_lea.hbm %s133_s29, 16  ;;  %p835_p10 = scmp.lt.s32.totalorder %s133_s29, %s1445_s3 }
  0x2e   : > { %p833_p8 = scmp.ne.s32.totalorder %s133_s29, %s832_s5  ;;  %p836_p11 = scmp.lt.s32.totalorder %s1236_s16, %s832_s5 }
  0x30   : > { %p837_p12 = por %p836_p11, %p835_p10 }
  0x32   : > { %p838_p0 = pnand %p837_p12, %p833_p8 }
  0x34   : > { %841 = shalt.err (!%p838_p0)  }
  0x35   : > { %s842_s11 = scalar_lea.vmem %s1216_s13, 16  ;;  %s1245_s21 = scalar_lea.vmem %s1216_s13, 128 }
  0x36   : > { %p843_p1 = scmp.ne.s32.totalorder %s1216_s13, %s842_s11  ;;  %p847_p2 = scmp.lt.s32.totalorder %s1216_s13, %s1216_s13 }
  0x37   : > { %p848_p3 = scmp.lt.s32.totalorder %s1245_s21, %s842_s11 }
  0x39   : > { %p849_p4 = por %p848_p3, %p847_p2 }
  0x3b   : > { %p850_p7 = pnand %p849_p4, %p843_p1 }
  0x3d   : > { %853 = shalt.err (!%p850_p7)  }
  0x3e   : > { %144 = dma.hbm_to_vmem [thread:$0]  %s133_s29, 16, %s1216_s13, [#allocation4] }
  0x3f   : > { %s1471_s20 = smov (!%p660_p5, %s155_s20), 31  ;;  %s1107_s27 = smov [#allocation2 + $0x2]  }
  0x40   : > { %s183_s8 = scalar_select %p182_p6, %s1221_s19, 0 }
  0x41   : > { %s665_s26 = sshll.u32 %s1471_s20, 4  ;;  %s197_s5 = sshll.u32 %s1107_s27, 4  ;;  %s1259_s5 = int_to_ptr.vmem [resolvable:$true] %s197_s5 }
  0x42   : > { %s159_s17 = scalar_lea.hbm %s1445_s3, %s665_s26 }
  0x43   : > { %s854_s11 = scalar_lea.hbm %s159_s17, 16  ;;  %p857_p8 = scmp.lt.s32.totalorder %s159_s17, %s1445_s3 }
  0x44   : > { %p855_p7 = scmp.ne.s32.totalorder %s159_s17, %s854_s11  ;;  %p858_p10 = scmp.lt.s32.totalorder %s1236_s16, %s854_s11 }
  0x46   : > { %p859_p11 = por %p858_p10, %p857_p8 }
  0x48   : > { %p860_p5 = pnand %p859_p11, %p855_p7 }
  0x4a   : > { %863 = shalt.err (!%p860_p5)  }
  0x4b   : > { %s864_s15 = scalar_lea.vmem %s1223_s18, 16  ;;  %p869_p12 = scmp.lt.s32.totalorder %s1223_s18, %s1216_s13 }
  0x4c   : > { %p865_p6 = scmp.ne.s32.totalorder %s1223_s18, %s864_s15  ;;  %p870_p0 = scmp.lt.s32.totalorder %s1245_s21, %s864_s15 }
  0x4e   : > { %p871_p1 = por %p870_p0, %p869_p12 }
  0x50   : > { %p872_p2 = pnand %p871_p1, %p865_p6 }
  0x52   : > { %875 = shalt.err (!%p872_p2)  }
  0x53   : > { %172 = dma.hbm_to_vmem [thread:$0]  %s159_s17, 16, %s1223_s18, [#allocation4 + $0x1] }
  0x54   : > { %p1455_p3 = scmp.lt.s32.totalorder %s1221_s19, 31  ;;  %s208_s24 = sadd.s32 3, %s1208_s9 }
  0x55   : > { %s1274_s20 = sld [smem:[#allocation6 + %s208_s24]] }
  0x56   : > { %s1473_s8 = smov (!%p1455_p3, %s183_s8), 31 }
  0x57   : > { %s672_s28 = sshll.u32 %s1473_s8, 4 }
  0x58   : > { %s187_s27 = scalar_lea.hbm %s1445_s3, %s672_s28 }
  0x59   : > { %s876_s12 = scalar_lea.hbm %s187_s27, 16  ;;  %p879_p7 = scmp.lt.s32.totalorder %s187_s27, %s1445_s3 }
  0x5a   : > { %p877_p4 = scmp.ne.s32.totalorder %s187_s27, %s876_s12  ;;  %p880_p8 = scmp.lt.s32.totalorder %s1236_s16, %s876_s12 }
  0x5c   : > { %p881_p10 = por %p880_p8, %p879_p7 }
  0x5e   : > { %p882_p11 = pnand %p881_p10, %p877_p4 }
  0x60   : > { %885 = shalt.err (!%p882_p11)  }
  0x61   : > { %s886_s18 = scalar_lea.vmem %s1259_s5, 16  ;;  %p891_p6 = scmp.lt.s32.totalorder %s1259_s5, %s1216_s13 }
  0x62   : > { %p887_p5 = scmp.ne.s32.totalorder %s1259_s5, %s886_s18  ;;  %p892_p12 = scmp.lt.s32.totalorder %s1245_s21, %s886_s18 }
  0x64   : > { %p893_p0 = por %p892_p12, %p891_p6 }
  0x66   : > { %p894_p1 = pnand %p893_p0, %p887_p5 }
  0x68   : > { %897 = shalt.err (!%p894_p1)  }
  0x69   : > { %200 = dma.hbm_to_vmem [thread:$0]  %s187_s27, 16, %s1259_s5, [#allocation4 + $0x2] }
  0x6a   : > { %s1108_s19 = smov [#allocation2 + $0x3]   ;;  %s236_s17 = sadd.s32 4, %s1208_s9 }
  0x6b   : > { %s225_s8 = sshll.u32 %s1108_s19, 4  ;;  %s1290_s15 = sld [smem:[#allocation6 + %s236_s17]]  ;;  %s226_s8 = int_to_ptr.vmem [resolvable:$true] %s225_s8 }
  0x6c   : > { %s1109_s24 = smov [#allocation2 + $0x4]   ;;  %s264_s29 = sadd.s32 5, %s1208_s9 }
  0x6d   : > { %s253_s28 = sshll.u32 %s1109_s24, 4  ;;  %p210_p2 = scmp.gt.s32.totalorder %s1274_s20, 0  ;;  %s1298_s28 = int_to_ptr.vmem [resolvable:$true] %s253_s28 }
  0x6e   : > { %p674_p3 = scmp.lt.s32.totalorder %s1274_s20, 31  ;;  %s1295_s26 = sld [smem:[#allocation6 + %s264_s29]] }
  0x6f   : > { %s1475_s20 = smov (!%p210_p2, %s1274_s20), 0  ;;  %s292_s5 = sadd.s32 6, %s1208_s9 }
  0x70   : > { %s1477_s20 = smov (!%p674_p3, %s1475_s20), 31 }
  0x71   : > { %p238_p4 = scmp.gt.s32.totalorder %s1290_s15, 0  ;;  %s679_s27 = sshll.u32 %s1477_s20, 4 }
  0x72   : > { %s215_s11 = scalar_lea.hbm %s1445_s3, %s679_s27 }
  0x73   : > { %s898_s18 = scalar_lea.hbm %s215_s11, 16  ;;  %p901_p11 = scmp.lt.s32.totalorder %s215_s11, %s1445_s3 }
  0x74   : > { %p266_p8 = scmp.gt.s32.totalorder %s1295_s26, 0  ;;  %p899_p10 = scmp.ne.s32.totalorder %s215_s11, %s898_s18 }
  0x75   : > { %p902_p5 = scmp.lt.s32.totalorder %s1236_s16, %s898_s18 }
  0x77   : > { %p903_p6 = por %p902_p5, %p901_p11 }
  0x79   : > { %p904_p12 = pnand %p903_p6, %p899_p10 }
  0x7b   : > { %907 = shalt.err (!%p904_p12)  }
  0x7c   : > { %s908_s24 = scalar_lea.vmem %s226_s8, 16  ;;  %p913_p1 = scmp.lt.s32.totalorder %s226_s8, %s1216_s13 }
  0x7d   : > { %p909_p0 = scmp.ne.s32.totalorder %s226_s8, %s908_s24  ;;  %p914_p2 = scmp.lt.s32.totalorder %s1245_s21, %s908_s24 }
  0x7f   : > { %p915_p3 = por %p914_p2, %p913_p1 }
  0x81   : > { %p916_p7 = pnand %p915_p3, %p909_p0 }
  0x83   : > { %919 = shalt.err (!%p916_p7)  }
  0x84   : > { %228 = dma.hbm_to_vmem [thread:$0]  %s215_s11, 16, %s226_s8, [#allocation4 + $0x3] }
  0x85   : > { %s239_s20 = scalar_select %p238_p4, %s1290_s15, 0 }
  0x86   : > { %s267_s29 = scalar_select %p266_p8, %s1295_s26, 0 }
  0x87   : > { %p1456_p10 = scmp.lt.s32.totalorder %s1290_s15, 31  ;;  %p688_p11 = scmp.lt.s32.totalorder %s1295_s26, 31 }
  0x88   : > { %s1110_s27 = smov [#allocation2 + $0x5]   ;;  %s1322_s18 = sld [smem:[#allocation6 + %s292_s5]] }
  0x89   : > { %s1479_s20 = smov (!%p1456_p10, %s239_s20), 31  ;;  %s281_s12 = sshll.u32 %s1110_s27, 4  ;;  %s282_s12 = int_to_ptr.vmem [resolvable:$true] %s281_s12 }
  0x8a   : > { %s686_s14 = sshll.u32 %s1479_s20, 4 }
  0x8b   : > { %s243_s19 = scalar_lea.hbm %s1445_s3, %s686_s14 }
  0x8c   : > { %s920_s17 = scalar_lea.hbm %s243_s19, 16  ;;  %p923_p4 = scmp.lt.s32.totalorder %s243_s19, %s1445_s3 }
  0x8d   : > { %p921_p7 = scmp.ne.s32.totalorder %s243_s19, %s920_s17  ;;  %p924_p5 = scmp.lt.s32.totalorder %s1236_s16, %s920_s17 }
  0x8f   : > { %p925_p8 = por %p924_p5, %p923_p4 }
  0x91   : > { %p926_p6 = pnand %p925_p8, %p921_p7 }
  0x93   : > { %929 = shalt.err (!%p926_p6)  }
  0x94   : > { %s930_s15 = scalar_lea.vmem %s1298_s28, 16  ;;  %p935_p0 = scmp.lt.s32.totalorder %s1298_s28, %s1216_s13 }
  0x95   : > { %p931_p12 = scmp.ne.s32.totalorder %s1298_s28, %s930_s15  ;;  %p936_p1 = scmp.lt.s32.totalorder %s1245_s21, %s930_s15 }
  0x97   : > { %p937_p2 = por %p936_p1, %p935_p0 }
  0x99   : > { %p938_p3 = pnand %p937_p2, %p931_p12 }
  0x9b   : > { %941 = shalt.err (!%p938_p3)  }
  0x9c   : > { %256 = dma.hbm_to_vmem [thread:$0]  %s243_s19, 16, %s1298_s28, [#allocation4 + $0x4] }
  0x9d   : > { %s1481_s29 = smov (!%p688_p11, %s267_s29), 31  ;;  %s1111_s7 = smov [#allocation2 + $0x6]  }
  0x9e   : > { %s309_s5 = sshll.u32 %s1111_s7, 4  ;;  %s693_s20 = sshll.u32 %s1481_s29, 4  ;;  %s310_s5 = int_to_ptr.vmem [resolvable:$true] %s309_s5 }
  0x9f   : > { %s320_s27 = sadd.s32 7, %s1208_s9  ;;  %s271_s11 = scalar_lea.hbm %s1445_s3, %s693_s20 }
  0xa0   : > { %p294_p10 = scmp.gt.s32.totalorder %s1322_s18, 0  ;;  %s942_s17 = scalar_lea.hbm %s271_s11, 16 }
  0xa1   : > { %p943_p7 = scmp.ne.s32.totalorder %s271_s11, %s942_s17  ;;  %p945_p4 = scmp.lt.s32.totalorder %s271_s11, %s1445_s3 }
  0xa2   : > { %p946_p5 = scmp.lt.s32.totalorder %s1236_s16, %s942_s17 }
  0xa4   : > { %p947_p8 = por %p946_p5, %p945_p4 }
  0xa6   : > { %p948_p6 = pnand %p947_p8, %p943_p7 }
  0xa8   : > { %951 = shalt.err (!%p948_p6)  }
  0xa9   : > { %s952_s28 = scalar_lea.vmem %s282_s12, 16  ;;  %p957_p12 = scmp.lt.s32.totalorder %s282_s12, %s1216_s13 }
  0xaa   : > { %p953_p11 = scmp.ne.s32.totalorder %s282_s12, %s952_s28  ;;  %p958_p0 = scmp.lt.s32.totalorder %s1245_s21, %s952_s28 }
  0xac   : > { %p959_p1 = por %p958_p0, %p957_p12 }
  0xae   : > { %p960_p2 = pnand %p959_p1, %p953_p11 }
  0xb0   : > { %963 = shalt.err (!%p960_p2)  }
  0xb1   : > { %284 = dma.hbm_to_vmem [thread:$0]  %s271_s11, 16, %s282_s12, [#allocation4 + $0x5] }
  0xb2   : > { %s295_s26 = scalar_select %p294_p10, %s1322_s18, 0 }
  0xb3   : > { %p695_p3 = scmp.lt.s32.totalorder %s1322_s18, 31  ;;  %s321_s29 = sld [smem:[#allocation6 + %s320_s27]] }
  0xb5   : > { %s1483_s26 = smov (!%p695_p3, %s295_s26), 31 }
  0xb6   : > { %s700_s19 = sshll.u32 %s1483_s26, 4 }
  0xb7   : > { %s299_s14 = scalar_lea.hbm %s1445_s3, %s700_s19 }
  0xb8   : > { %s964_s8 = scalar_lea.hbm %s299_s14, 16  ;;  %p967_p4 = scmp.lt.s32.totalorder %s299_s14, %s1445_s3 }
  0xb9   : > { %p965_p7 = scmp.ne.s32.totalorder %s299_s14, %s964_s8  ;;  %p968_p5 = scmp.lt.s32.totalorder %s1236_s16, %s964_s8 }
  0xbb   : > { %p969_p8 = por %p968_p5, %p967_p4 }
  0xbd   : > { %p970_p6 = pnand %p969_p8, %p965_p7 }
  0xbf   : > { %973 = shalt.err (!%p970_p6)  }
  0xc0   : > { %s974_s12 = scalar_lea.vmem %s310_s5, 16  ;;  %p979_p11 = scmp.lt.s32.totalorder %s310_s5, %s1216_s13 }
  0xc1   : > { %p975_p10 = scmp.ne.s32.totalorder %s310_s5, %s974_s12  ;;  %p980_p12 = scmp.lt.s32.totalorder %s1245_s21, %s974_s12 }
  0xc3   : > { %p981_p0 = por %p980_p12, %p979_p11 }
  0xc5   : > { %p982_p1 = pnand %p981_p0, %p975_p10 }
  0xc7   : > { %985 = shalt.err (!%p982_p1)  }
  0xc8   : > { %312 = dma.hbm_to_vmem [thread:$0]  %s299_s14, 16, %s310_s5, [#allocation4 + $0x6] }
  0xc9   : > { %p322_p2 = scmp.gt.s32.totalorder %s321_s29, 0  ;;  %p702_p3 = scmp.lt.s32.totalorder %s321_s29, 31 }
  0xca   : > { %s1112_s18 = smov [#allocation2 + $0x7]  }
  0xcb   : > { %s337_s27 = sshll.u32 %s1112_s18, 4  ;;  %s1485_s29 = smov (!%p322_p2, %s321_s29), 0  ;;  %s338_s27 = int_to_ptr.vmem [resolvable:$true] %s337_s27 }
  0xcc   : > { %s1487_s29 = smov (!%p702_p3, %s1485_s29), 31 }
  0xcd   : > { %s707_s11 = sshll.u32 %s1487_s29, 4 }
  0xce   : > { %s327_s26 = scalar_lea.hbm %s1445_s3, %s707_s11 }
  0xcf   : > { %s986_s19 = scalar_lea.hbm %s327_s26, 16  ;;  %p989_p4 = scmp.lt.s32.totalorder %s327_s26, %s1445_s3 }
  0xd0   : > { %p987_p7 = scmp.ne.s32.totalorder %s327_s26, %s986_s19  ;;  %p990_p5 = scmp.lt.s32.totalorder %s1236_s16, %s986_s19 }
  0xd2   : > { %p991_p8 = por %p990_p5, %p989_p4 }
  0xd4   : > { %p992_p6 = pnand %p991_p8, %p987_p7 }
  0xd6   : > { %995 = shalt.err (!%p992_p6)  }
  0xd7   : > { %s996_s5 = scalar_lea.vmem %s338_s27, 16  ;;  %p1001_p11 = scmp.lt.s32.totalorder %s338_s27, %s1216_s13 }
  0xd8   : > { %p997_p10 = scmp.ne.s32.totalorder %s338_s27, %s996_s5  ;;  %p1002_p12 = scmp.lt.s32.totalorder %s1245_s21, %s996_s5 }
  0xda   : > { %p1003_p0 = por %p1002_p12, %p1001_p11 }
  0xdc   : > { %p1004_p1 = pnand %p1003_p0, %p997_p10 }
  0xde   : > { %1007 = shalt.err (!%p1004_p1)  }
  0xdf   : > { %340 = dma.hbm_to_vmem [thread:$0]  %s327_s26, 16, %s338_s27, [#allocation4 + $0x7] }
  0xe0   : > { %s118_s29 = scalar_lea.vmem [#allocation8], %s1212_s10  ;;  %p708_p2 = scmp.ne.s32.totalorder %s1094_s23, 0 }
  0xe1   : > { %s345_s14 = sld [smem:[#allocation7]] (!%p708_p2) }
  0xe2   : > { %344 = sbr.rel (%p708_p2) target bundleno = 327 (0x147), region = 60 }
  0xe7   : > { %v346_v0 = vlaneseq  ;;  %v350_v4 = vstv %s345_s14  ;;  %v709_v7 = vld [vmem:[%s1444_s2] ss:$0 sm:$0xff]  ;;  %v1113_v23 = vmov 683565275   ;;  %v1114_v25 = vmov 2475754826  }
  0xe8   : > { %v1115_v27 = vmov 2131351028   ;;  %v1116_v29 = vmov 2102212464   ;;  %v1117_v31 = vmov 920167782  }
  0xe9   : > { %v354_v1 = vand.u32 127, %v346_v0  ;;  %v347_v2 = vshrl.u32 %v346_v0, 7  ;;  %v1118_v38 = vmov 1326507024   ;;  %vm482_vm13 = vcmask 261120  }
  0xeb   : > { %v359_v3 = vand.u32 1, %v354_v1  ;;  %v351_v6 = vadd.s32 %v350_v4, %v347_v2 }
  0xed   : > { %v367_v5 = vcvt.s32.f32 %v359_v3  ;;  %v352_v8 = vcvt.s32.f32 %v351_v6 }
  0xef   : > { %v376_v9 = vmul.f32 1.5707964, %v367_v5  ;;  %v375_v10 = vmul.f32 %v709_v7, %v352_v8 }
  0xf1   : > { %v1377_v11 = vadd.f32 %v376_v9, %v375_v10 }
  0xf3   : > { %v381_v12 = vand.u32 2139095040, %v1377_v11  ;;  %v378_v14 = vand.u32 2147483647, %v1377_v11  ;;  %vm380_vm7 = vcmp.lt.s32.totalorder %v1377_v11, 0  ;;  %vm470_vm12 = vweird.f32 %v1377_v11 }
  0xf5   : > { %v382_v13 = vshrl.u32 %v381_v12, 23  ;;  %v385_v17 = vand.u32 8388607, %v378_v14  ;;  %vm379_vm8 = vcmp.le.f32.partialorder %v378_v14, 0.7853982 }
  0xf7   : > { %v710_v15 = vadd.s32 4294967169, %v382_v13  ;;  %v386_v20 = vor.u32 8388608, %v385_v17 }
  0xf9   : > { %v388_v16 = vadd.s32 1, %v710_v15  ;;  %v426_v40 = vshll.u32 %v386_v20, 8 }
  0xfb   : > { %vm389_vm0 = vcmp.gt.s32.totalorder %v388_v16, 0 }
  0xfc   : > { %v390_v18 = vsel %vm389_vm0, %v388_v16, 0 }
  0xfd   : > { %v392_v19 = vand.u32 31, %v390_v18  ;;  %v391_v21 = vshrl.u32 %v390_v18, 5 }
  0xff   : > { %v393_v22 = vsub.s32 32, %v392_v19  ;;  %v395_v24 = vshll.u32 %v1113_v23, %v392_v19  ;;  %v398_v26 = vshll.u32 %v1114_v25, %v392_v19  ;;  %v401_v28 = vshll.u32 %v1115_v27, %v392_v19 }
 0x100   : > { %v404_v30 = vshll.u32 %v1116_v29, %v392_v19  ;;  %v407_v32 = vshll.u32 %v1117_v31, %v392_v19  ;;  %vm410_vm1 = vcmp.lt.s32.totalorder %v391_v21, 1  ;;  %vm413_vm2 = vcmp.lt.s32.totalorder %v391_v21, 4 }
 0x101   : > { %v394_v33 = vshrl.u32 %v1113_v23, %v393_v22  ;;  %v396_v34 = vshrl.u32 %v1114_v25, %v393_v22  ;;  %v399_v35 = vshrl.u32 %v1115_v27, %v393_v22  ;;  %v402_v36 = vshrl.u32 %v1116_v29, %v393_v22 }
 0x102   : > { %v405_v37 = vshrl.u32 %v1117_v31, %v393_v22  ;;  %v408_v39 = vshrl.u32 %v1118_v38, %v393_v22  ;;  %vm411_vm3 = vcmp.lt.s32.totalorder %v391_v21, 2  ;;  %vm412_vm4 = vcmp.lt.s32.totalorder %v391_v21, 3 }
 0x103   : > { %v397_v41 = vor.u32 %v396_v34, %v395_v24  ;;  %v400_v42 = vor.u32 %v399_v35, %v398_v26  ;;  %v403_v43 = vor.u32 %v402_v36, %v401_v28 }
 0x104   : > { %v406_v44 = vor.u32 %v405_v37, %v404_v30  ;;  %v409_v45 = vor.u32 %v408_v39, %v407_v32 }
 0x105   : > { %v414_v46 = vsel %vm410_vm1, %v394_v33, %v397_v41  ;;  %v415_v47 = vsel %vm413_vm2, %v403_v43, 2102212464  ;;  %v418_v48 = vsel %vm410_vm1, %v397_v41, %v400_v42  ;;  %v422_v49 = vsel %vm410_vm1, %v400_v42, %v403_v43 }
 0x106   : > { %v416_v50 = vsel %vm412_vm4, %v400_v42, %v415_v47  ;;  %v419_v51 = vsel %vm413_vm2, %v406_v44, 920167782  ;;  %v423_v52 = vsel %vm413_vm2, %v409_v45, 1326507024 }
 0x107   : > { %v420_v53 = vsel %vm412_vm4, %v403_v43, %v419_v51  ;;  %v424_v54 = vsel %vm412_vm4, %v406_v44, %v423_v52  ;;  %v417_v55 = vsel %vm411_vm3, %v414_v46, %v416_v50 }
 0x108   : > { %v421_v56 = vsel %vm411_vm3, %v418_v48, %v420_v53  ;;  %v425_v57 = vsel %vm411_vm3, %v422_v49, %v424_v54  ;;  %v433_v62 = vmul.u32 %v426_v40, %v417_v55 }
 0x109   : > { %v1383_v58 = vmul.u32.u64.low %v426_v40, %v425_v57  ;;  %v1384_v59 = vmul.u32.u64.high %v426_v40, %v425_v57, %v1383_v58  ;;  %v1386_v60 = vmul.u32.u64.low %v426_v40, %v421_v56  ;;  %v1387_v61 = vmul.u32.u64.high %v426_v40, %v421_v56, %v1386_v60 }
 0x10b   : > { %vm435_vm5 = vc.u32 %v1384_v59, %v1386_v60  ;;  %v436_v63 = vadd.s32 1, %v1387_v61  ;;  %v434_v10 = vadd.s32 %v1386_v60, %v1384_v59 }
 0x10d   : > { %v437_v0 = vsel %vm435_vm5, %v436_v63, %v1387_v61 }
 0x10e   : > { %v438_v1 = vadd.s32 %v437_v0, %v433_v62 }
 0x110   : > { %v439_v2 = vadd.s32 536870912, %v438_v1 }
 0x112   : > { %v440_v3 = vshrl.u32 %v439_v2, 30 }
 0x114   : > { %v441_v4 = vshll.u32 %v440_v3, 30  ;;  %v464_v25 = vsub.s32 4, %v440_v3 }
 0x116   : > { %v442_v5 = vsub.s32 %v438_v1, %v441_v4  ;;  %v465_v28 = vsel %vm380_vm7, %v464_v25, %v440_v3 }
 0x117   : > { %v467_v30 = vsel %vm379_vm8, 0, %v465_v28 }
 0x118   : > { %v444_v6 = vsub.s32 0, %v442_v5  ;;  %v471_v31 = vadd.s32 3, %v467_v30 }
 0x11a   : > { %v711_v7 = vmin.u32 %v444_v6, %v442_v5  ;;  %v472_v32 = vand.u32 3, %v471_v31 }
 0x11c   : > { %v446_v8 = vclz %v711_v7  ;;  %vm477_vm9 = vcmp.eq.s32.totalorder %v472_v32, 2  ;;  %vm474_vm10 = vcmp.eq.s32.totalorder %v472_v32, 0  ;;  %vm473_vm11 = vcmp.lt.s32.totalorder %v472_v32, 2 }
 0x11e   : > { %v712_v9 = vadd.s32 4294967294, %v446_v8 }
 0x120   : > { %vm713_vm6 = vcmp.lt.s32.totalorder %v712_v9, 0 }
 0x121   : > { %v449_v12 = vsel %vm713_vm6, 0, %v712_v9 }
 0x122   : > { %v450_v13 = vsub.s32 32, %v449_v12  ;;  %v451_v15 = vshll.u32 %v442_v5, %v449_v12  ;;  %v454_v16 = vsub.s32 4294967266, %v449_v12 }
 0x124   : > { %v452_v17 = vshrl.u32 %v434_v10, %v450_v13  ;;  %v455_v18 = vadd.s32 127, %v454_v16 }
 0x126   : > { %v453_v19 = vor.u32 %v452_v17, %v451_v15  ;;  %v456_v20 = vshll.u32 %v455_v18, 23 }
 0x128   : > { %v457_v21 = vor.u32 4788187, %v456_v20  ;;  %v460_v22 = vcvt.s32.f32 %v453_v19 }
 0x12a   : > { %v458_v23 = vand.u32 2147483647, %v457_v21 }
 0x12c   : > { %v461_v24 = vmul.f32 %v460_v22, %v458_v23 }
 0x12e   : > { %v462_v26 = vxor.u32 2147483648, %v461_v24 }
 0x130   : > { %v463_v27 = vsel %vm380_vm7, %v462_v26, %v461_v24 }
 0x131   : > { %v466_v29 = vsel %vm379_vm8, %v1377_v11, %v463_v27 }
 0x132   : > { %816 = vcosq.f32 %v466_v29 }
 0x133   : > { %818 = vsinq.f32 %v466_v29 }
 0x13f   : > { %v817_v33 = vpop.eup %816 }
 0x140   : > { %v819_v34 = vpop.eup %818  ;;  %v478_v35 = vxor.u32 2147483648, %v817_v33 }
 0x141   : > { %v475_v36 = vxor.u32 2147483648, %v819_v34 }
 0x142   : > { %v479_v14 = vsel %vm477_vm9, %v478_v35, %v819_v34 }
 0x143   : > { %v476_v37 = vsel %vm474_vm10, %v817_v33, %v475_v36 }
 0x144   : > { %v480_v38 = vsel %vm473_vm11, %v476_v37, %v479_v14 }
 0x145   : > { %v481_v39 = vsel %vm470_vm12, nan, %v480_v38 }
 0x146   : > { %483 = vst.msk [vmem:[#allocation3] sm:$0xff] %vm482_vm13, %v481_v39 }
 0x147 PF: > { %1060 = dma.done.wait [#allocation4], 16 }
 0x148   : > { %1061 = vsyncadd [#allocation4], 4294967280 }
 0x149   : > { %1062 = dma.done.wait [#allocation4 + $0x1], 16 }
 0x14a   : > { %1063 = vsyncadd [#allocation4 + $0x1], 4294967280 }
 0x14b   : > { %1064 = dma.done.wait [#allocation4 + $0x2], 16 }
 0x14c   : > { %1065 = vsyncadd [#allocation4 + $0x2], 4294967280 }
 0x14d   : > { %1066 = dma.done.wait [#allocation4 + $0x3], 16 }
 0x14e   : > { %1067 = vsyncadd [#allocation4 + $0x3], 4294967280 }
 0x14f   : > { %1068 = dma.done.wait [#allocation4 + $0x4], 16 }
 0x150   : > { %1069 = vsyncadd [#allocation4 + $0x4], 4294967280 }
 0x151   : > { %1070 = dma.done.wait [#allocation4 + $0x5], 16 }
 0x152   : > { %1071 = vsyncadd [#allocation4 + $0x5], 4294967280 }
 0x153   : > { %1072 = dma.done.wait [#allocation4 + $0x6], 16 }
 0x154   : > { %1073 = vsyncadd [#allocation4 + $0x6], 4294967280 }
 0x155   : > { %1074 = dma.done.wait [#allocation4 + $0x7], 16 }
 0x156   : > { %1075 = vsyncadd [#allocation4 + $0x7], 4294967280  ;;  %s520_s23 = sshll.u32 %s118_s29, 4  ;;  %v500_v11 = vld [vmem:[#allocation2] sm:$0xff]  ;;  %v501_v40 = vld [vmem:[#allocation3] sm:$0xff]  ;;  %vm503_vm14 = vcmask 261120   ;;  %s518_s17 = scalar_lea.hbm %s1446_s4, %s1208_s9  ;;  %s521_s23 = int_to_ptr.vmem [resolvable:$true] %s520_s23 }
 0x157   : > { %v502_v41 = vadd.f32 %v501_v40, %v500_v11  ;;  %s1457_s24 = sand.u32 1, %s1086_s22   ;;  %s1008_s18 = scalar_lea.vmem %s521_s23, 128 }
 0x158   : > { %s506_s12 = scalar_lea.sflag [#allocation9], %s1457_s24  ;;  %p1009_p3 = scmp.ne.s32.totalorder %s521_s23, %s1008_s18 }
 0x159   : > { %504 = vst.msk [vmem:[%s118_s29] sm:$0xff] %vm503_vm14, %v502_v41  ;;  %s1119_s27 = smov [#allocation8]  }
 0x15a   : > { %p1010_p7 = pnand %p1009_p3, %p1191_p9  ;;  %s1012_s11 = sshll.u32 %s1119_s27, 4  ;;  %s1013_s11 = int_to_ptr.vmem [resolvable:$false] %s1012_s11 }
 0x15b   : > { %s1014_s15 = scalar_lea.vmem %s1013_s11, 256  ;;  %p1015_p5 = scmp.lt.s32.totalorder %s521_s23, %s1013_s11 }
 0x15c   : > { %p1011_p4 = pneg %p1010_p7  ;;  %p1016_p8 = scmp.lt.s32.totalorder %s1014_s15, %s1008_s18 }
 0x15e   : > { %p1017_p6 = por %p1016_p8, %p1015_p5 }
 0x160   : > { %p1018_p10 = pnand %p1017_p6, %p1011_p4 }
 0x162   : > { %1021 = shalt.err (!%p1018_p10)
}
 0x163   : > { %s1022_s9 = scalar_lea.hbm %s518_s17, 128  ;;  %s1026_s26 = scalar_lea.hbm %s1446_s4, 256 }
 0x164   : > { %p1023_p11 = scmp.ne.s32.totalorder %s518_s17, %s1022_s9  ;;  %p1027_p1 = scmp.lt.s32.totalorder %s518_s17, %s1446_s4 }
 0x165   : > { %p1028_p2 = scmp.lt.s32.totalorder %s1026_s26, %s1022_s9 }
 0x166   : > { %p1024_p12 = pnand %p1023_p11, %p1191_p9 }
 0x167   : > { %p1029_p3 = por %p1028_p2, %p1027_p1 }
 0x168   : > { %p1025_p0 = pneg %p1024_p12 }
 0x16a   : > { %p1030_p7 = pnand %p1029_p3, %p1025_p0 }
 0x16c   : > { %1033 = shalt.err (!%p1030_p7)
}
 0x16d   : > { %746 = dma.vmem_to_hbm [thread:$0]  (%p1191_p9), %s521_s23, 128, %s518_s17, %s506_s12  }
 0x16e PF: > { %p752_p4 = scmp.ge.s32.totalorder %s1102_s25, 2  ;;  %s532_s20 = sand.u32 1, %s1082_s0  }
 0x16f   : > { %s533_s5 = scalar_lea.sflag [#allocation9], %s532_s20 }
 0x170   : > { %p749_p5 = pnand %p752_p4, %p1198_p13 }
 0x172   : > { %p750_p8 = pneg %p749_p5 }
 0x174   : > { %1077 = dma.done.wait (%p750_p8), %s533_s5, 128  }
 0x175   : > { %1079 = vsyncadd (%p750_p8), %s533_s5, 4294967168  ;;  %s24_s25 = sadd.s32 1, %s1102_s25   ;;  %s1458_s29 = sld [smem:[#allocation40_spill]] }
 0x176   : > { %p21_p6 = scmp.ge.s32.totalorder %s24_s25, 4   ;;  %s1459_s23 = sld [smem:[#allocation38_spill]] }
 0x177   : > { %s1460_s24 = sld [smem:[#allocation39_spill]]  ;;  %s1461_s0 = smov %s1086_s22 }
 0x178   : > { %s1462_s22 = smov %s1090_s1  ;;  %23 = sbr.rel (!%p21_p6) target bundleno = 19 (0x13), region = 121 }
 0x17b   : > { %s1463_s1 = smov %s1458_s29 }
 0x17d   :  { %538 = vsyncpa [#allocation9], 1 }
 0x17e   :  { %540 = vsyncpa [#allocation9 + $0x1], 1 }
 0x17f   :  { %541 = vsyncmov [#allocation4] }
 0x182   :  { %s542_s30 = vpop.sfrf %541 }
 0x183   :  { %p718_p9 = scmp.ne.s32.totalorder %s542_s30, 0 }
 0x185   :  { %546 = shalt.err (%p718_p9)  }
 0x186   :  { %548 = vsyncmov [#allocation4 + $0x1] }
 0x189   :  { %s549_s6 = vpop.sfrf %548 }
 0x18a   :  { %p719_p13 = scmp.ne.s32.totalorder %s549_s6, 0 }
 0x18c   :  { %553 = shalt.err (%p719_p13)  }
 0x18d   :  { %555 = vsyncmov [#allocation4 + $0x2] }
 0x190   :  { %s556_s14 = vpop.sfrf %555 }
 0x191   :  { %p720_p10 = scmp.ne.s32.totalorder %s556_s14, 0 }
 0x193   :  { %560 = shalt.err (%p720_p10)  }
 0x194   :  { %562 = vsyncmov [#allocation4 + $0x3] }
 0x197   :  { %s563_s16 = vpop.sfrf %562 }
 0x198   :  { %p721_p11 = scmp.ne.s32.totalorder %s563_s16, 0 }
 0x19a   :  { %567 = shalt.err (%p721_p11)  }
 0x19b   :  { %569 = vsyncmov [#allocation4 + $0x4] }
 0x19e   :  { %s570_s25 = vpop.sfrf %569 }
 0x19f   :  { %p722_p12 = scmp.ne.s32.totalorder %s570_s25, 0 }
 0x1a1   :  { %574 = shalt.err (%p722_p12)  }
 0x1a2   :  { %576 = vsyncmov [#allocation4 + $0x5] }
 0x1a5   :  { %s577_s2 = vpop.sfrf %576 }
 0x1a6   :  { %p723_p0 = scmp.ne.s32.totalorder %s577_s2, 0 }
 0x1a8   :  { %581 = shalt.err (%p723_p0)  }
 0x1a9   :  { %583 = vsyncmov [#allocation4 + $0x6] }
 0x1ac   :  { %s584_s3 = vpop.sfrf %583 }
 0x1ad   :  { %p724_p1 = scmp.ne.s32.totalorder %s584_s3, 0 }
 0x1af   :  { %588 = shalt.err (%p724_p1)  }
 0x1b0   :  { %590 = vsyncmov [#allocation4 + $0x7] }
 0x1b3   :  { %s591_s4 = vpop.sfrf %590 }
 0x1b4   :  { %p725_p2 = scmp.ne.s32.totalorder %s591_s4, 0 }
 0x1b6   :  { %595 = shalt.err (%p725_p2)  }

</bundles_post_ra>
